<compile_context>
chip_gen: v5e
topology: v5e:2x2
jax: 0.10.0
libtpu: 0.0.40
codegen_flags: <defaults>
</compile_context>

<pallas_src>
import functools

import jax
import jax.numpy as jnp
from jax import lax
from jax.experimental import pallas as pl
from jax.experimental.pallas import tpu as pltpu


def _loss_leaf_kernel(sf_ref, tf_ref, st_ref, lab_ref, o_ref, *,
                      temperature, alpha, alpha2,
                      n_rows, block_rows, needs_row_mask):
    bn, c = sf_ref.shape
    f32 = jnp.float32

    sf = sf_ref[...].astype(f32)      # student ("fake") logits
    tf = tf_ref[...].astype(f32)      # teacher logits
    st = st_ref[...].astype(f32)      # "true" head logits
    lab = lab_ref[...]                # (bn, 1) int32 labels

    lane = lax.broadcasted_iota(jnp.int32, (bn, c), 1)
    onehot = lane == lab              # (bn, c) bool

    inv_t = 1.0 / temperature

    # ---- student log-softmax at temperature T (KL term) --------------------
    s = sf if temperature == 1.0 else sf * inv_t
    s_max = jnp.max(s, axis=-1, keepdims=True)
    s_shift = s - s_max
    sum_es = jnp.sum(jnp.exp(s_shift), axis=-1, keepdims=True)
    log_sum_es = jnp.log(sum_es)
    log_p = s_shift - log_sum_es

    # ---- teacher softmax at temperature T (KL term) -------------------------
    t = tf if temperature == 1.0 else tf * inv_t
    t_max = jnp.max(t, axis=-1, keepdims=True)
    t_shift = t - t_max
    e_t = jnp.exp(t_shift)
    sum_et = jnp.sum(e_t, axis=-1, keepdims=True)
    # Per-row reciprocal + per-element multiply: no (bn, c) divide.  Exact
    # reciprocal (approx=False) keeps the scalar loss faithful.
    q = e_t * pl.reciprocal(sum_et) + 1e-7
    # Exact PyTorch formula: log(softmax + 1e-7) (the analytic log-softmax
    # shortcut was flagged as diverging for classes with p << 1e-7).
    log_q = jnp.log(q)

    kl_row = jnp.sum(q * (log_q - log_p), axis=-1, keepdims=True)

    # ---- cross-entropy log-sum-exp terms (temperature 1) --------------------
    if temperature == 1.0:
        lse_fake = s_max + log_sum_es  # reuse the T == 1 softmax pass
    else:
        f_max = jnp.max(sf, axis=-1, keepdims=True)
        lse_fake = f_max + jnp.log(
            jnp.sum(jnp.exp(sf - f_max), axis=-1, keepdims=True))

    u_max = jnp.max(st, axis=-1, keepdims=True)
    lse_true = u_max + jnp.log(
        jnp.sum(jnp.exp(st - u_max), axis=-1, keepdims=True))

    # Fused one-hot extraction: picked_fake + alpha2 * picked_true in a single
    # select + lane reduction.
    picked = jnp.sum(jnp.where(onehot, sf + alpha2 * st, 0.0),
                     axis=-1, keepdims=True)

    row_total = (lse_fake + alpha2 * lse_true - picked
                 + (alpha * temperature * temperature) * kl_row)

    if needs_row_mask:                # static: only when N % block_rows != 0
        # Partial last row-tile reads undefined edge-padding rows; all math so
        # far is per-row (axis=-1), so discarding those rows here is safe.
        row_id = (pl.program_id(0) * block_rows
                  + lax.broadcasted_iota(jnp.int32, (bn, 1), 0))
        row_total = jnp.where(row_id < n_rows, row_total, 0.0)

    o_ref[...] = row_total            # per-row partial loss for this tile


def _vmem_limit_bytes():
    """Generation-aware scoped-VMEM request: ~3/4 of physical VMEM, capped at
    96 MiB (128 MiB parts: v5e/v6e); conservative 48 MiB fallback fits v7x."""
    try:
        cap = int(pltpu.get_tpu_info().vmem_capacity_bytes)
        if cap > 0:
            return min((cap * 3) // 4, 96 * 1024 * 1024)
    except Exception:
        pass
    return 48 * 1024 * 1024


def _choose_block_rows(n, c, in_itemsize, vmem_limit):
    """Largest batch tile (multiple of 8, <=1024) whose working set — 3 logit
    blocks double-buffered (+labels) plus ~8 f32 elementwise temporaries —
    stays within half of the scoped-VMEM request, then capped so the parallel
    grid has >=2 (ideally >=4) tiles for v7x's two TensorCores."""
    budget = vmem_limit // 2
    c_lanes = ((c + 127) // 128) * 128          # physical lane footprint
    per_row = c_lanes * (6 * in_itemsize + 8 * 4) + 8
    bn = int(max(8, min(1024, (budget // per_row) // 8 * 8)))
    # TODO(synk): for class counts so large that even an 8-row tile overflows
    # the budget, the class axis itself needs tiling (two-pass softmax).
    if n > 8:
        target_tiles = 4 if n >= 32 else 2
        bn = min(bn, max(8, (n // target_tiles) // 8 * 8))
    if n <= bn:
        bn = n                                   # full-dim row block, no padding
    return bn


def loss_leaf_pallas(output_fake, teacher_outputs_fake, output_true, label,
                     temperature=1.0, alpha=1.0, alpha2=1.0):
    """Pallas implementation of Loss_Leaf.forward.  Logits: (N, C); label: (N,)."""
    n, c = output_fake.shape
    assert teacher_outputs_fake.shape == (n, c)
    assert output_true.shape == (n, c)
    assert label.shape == (n,)

    vmem_limit = _vmem_limit_bytes()
    bn = _choose_block_rows(n, c, output_fake.dtype.itemsize, vmem_limit)
    num_tiles = pl.cdiv(n, bn)
    n_padded = num_tiles * bn

    labels2d = label.astype(jnp.int32).reshape(n, 1)

    kernel = functools.partial(
        _loss_leaf_kernel,
        temperature=float(temperature), alpha=float(alpha), alpha2=float(alpha2),
        n_rows=n, block_rows=bn, needs_row_mask=(n_padded != n))

    row_losses = pl.pallas_call(
        kernel,
        out_shape=jax.ShapeDtypeStruct((n_padded, 1), jnp.float32),
        grid=(num_tiles,),
        in_specs=[
            pl.BlockSpec((bn, c), lambda i: (i, 0)),   # last dim = full C (legal
            pl.BlockSpec((bn, c), lambda i: (i, 0)),   # even when C % 128 != 0)
            pl.BlockSpec((bn, c), lambda i: (i, 0)),
            pl.BlockSpec((bn, 1), lambda i: (i, 0)),
        ],
        out_specs=pl.BlockSpec((bn, 1), lambda i: (i, 0)),
        compiler_params=pltpu.CompilerParams(
            dimension_semantics=("parallel",),   # no carried state -> both TCs on v7x
            vmem_limit_bytes=vmem_limit),
    )(output_fake, teacher_outputs_fake, output_true, labels2d)

    # Tiny epilogue in plain JAX: sum the per-row partials and apply the 1/N
    # shared by CE(mean) and KLDivLoss(batchmean).
    return jnp.sum(row_losses) * (1.0 / n)


def loss_leaf_reference(output_fake, teacher_fake, output_true, label,
                        temperature=1.0, alpha=1.0, alpha2=1.0):
    """Pure-JAX mirror of the PyTorch Loss_Leaf.forward."""
    t = temperature
    of = output_fake.astype(jnp.float32)
    tf = teacher_fake.astype(jnp.float32)
    ot = output_true.astype(jnp.float32)
    log_p = jax.nn.log_softmax(of / t, axis=1)
    q = jax.nn.softmax(tf / t, axis=1) + 1e-7
    kl = t * t * jnp.sum(q * (jnp.log(q) - log_p)) / of.shape[0]

    def ce(logits, labels):
        logp = jax.nn.log_softmax(logits, axis=1)
        return -jnp.mean(jnp.take_along_axis(logp, labels[:, None], axis=1))

    loss_non_leaf = ce(of, label) + alpha * kl
    return loss_non_leaf + alpha2 * ce(ot, label)


if __name__ == "__main__":
    key = jax.random.PRNGKey(0)
    k1, k2, k3, k4 = jax.random.split(key, 4)

    # --- case 1: defaults (temperature=1, alpha=1, alpha2=1), N=8, C=32 ------
    N, C = 8, 32
    output_fake = jax.random.normal(k1, (N, C), dtype=jnp.float32)
    teacher_fake = jax.random.normal(k2, (N, C), dtype=jnp.float32)
    output_true = jax.random.normal(k3, (N, C), dtype=jnp.float32)
    label = jax.random.randint(k4, (N,), 0, C)

    loss = loss_leaf_pallas(output_fake, teacher_fake, output_true, label)
    jax.block_until_ready(loss)
    ref = loss_leaf_reference(output_fake, teacher_fake, output_true, label)
    assert jnp.allclose(loss, ref, rtol=1e-4, atol=1e-5), (loss, ref)

    # --- case 2: T != 1 path with non-default weights -------------------------
    loss2 = loss_leaf_pallas(output_fake, teacher_fake, output_true, label,
                             temperature=3.0, alpha=10.0, alpha2=0.5)
    jax.block_until_ready(loss2)
    ref2 = loss_leaf_reference(output_fake, teacher_fake, output_true, label,
                               temperature=3.0, alpha=10.0, alpha2=0.5)
    assert jnp.allclose(loss2, ref2, rtol=1e-4, atol=1e-5), (loss2, ref2)

    # --- case 3: multi-tile grid, N not a multiple of 8, C not a multiple of 128
    N2, C2 = 20, 160
    j1, j2, j3, j4 = jax.random.split(jax.random.PRNGKey(1), 4)
    of2 = jax.random.normal(j1, (N2, C2), dtype=jnp.float32)
    tf2 = jax.random.normal(j2, (N2, C2), dtype=jnp.float32)
    ot2 = jax.random.normal(j3, (N2, C2), dtype=jnp.float32)
    lb2 = jax.random.randint(j4, (N2,), 0, C2)
    loss3 = loss_leaf_pallas(of2, tf2, ot2, lb2, temperature=2.0, alpha=3.0, alpha2=0.7)
    jax.block_until_ready(loss3)
    ref3 = loss_leaf_reference(of2, tf2, ot2, lb2, temperature=2.0, alpha=3.0, alpha2=0.7)
    assert jnp.allclose(loss3, ref3, rtol=1e-4, atol=1e-5), (loss3, ref3)

    # --- case 4: bf16 logits straight into the kernel (halves HBM traffic) ----
    loss4 = loss_leaf_pallas(of2.astype(jnp.bfloat16), tf2.astype(jnp.bfloat16),
                             ot2.astype(jnp.bfloat16), lb2,
                             temperature=2.0, alpha=3.0, alpha2=0.7)
    jax.block_until_ready(loss4)
    assert jnp.allclose(loss4, ref3, rtol=2e-2, atol=1e-2), (loss4, ref3)

    print("KERNEL_OK")
</pallas_src>

<mosaic_0001>
module attributes {stable_mosaic.version = 11 : i64} {
  func.func @_loss_leaf_kernel(%arg0: i32, %arg1: memref<8x32xf32, #tpu.memory_space<vmem>>, %arg2: memref<8x32xf32, #tpu.memory_space<vmem>>, %arg3: memref<8x32xf32, #tpu.memory_space<vmem>>, %arg4: memref<8x1xi32, #tpu.memory_space<vmem>>, %arg5: memref<8x1xf32, #tpu.memory_space<vmem>>) attributes {dimension_semantics = [#tpu.dimension_semantics<parallel>], iteration_bounds = array<i64: 1>, scalar_prefetch = 0 : i64, scratch_operands = 0 : i64, tpu.core_type = #tpu.core_type<tc>, window_params = [{transform_indices = @transform_0, window_bounds = array<i64: 8, 32>}, {transform_indices = @transform_1, window_bounds = array<i64: 8, 32>}, {transform_indices = @transform_2, window_bounds = array<i64: 8, 32>}, {transform_indices = @transform_3, window_bounds = array<i64: 8, 1>}, {transform_indices = @transform_4, window_bounds = array<i64: 8, 1>}]} {
    %c0 = arith.constant 0 : index
    %c0_0 = arith.constant 0 : index
    %0 = vector.load %arg1[%c0, %c0_0] : memref<8x32xf32, #tpu.memory_space<vmem>>, vector<8x32xf32>
    %c0_1 = arith.constant 0 : index
    %c0_2 = arith.constant 0 : index
    %1 = vector.load %arg2[%c0_1, %c0_2] : memref<8x32xf32, #tpu.memory_space<vmem>>, vector<8x32xf32>
    %c0_3 = arith.constant 0 : index
    %c0_4 = arith.constant 0 : index
    %2 = vector.load %arg3[%c0_3, %c0_4] : memref<8x32xf32, #tpu.memory_space<vmem>>, vector<8x32xf32>
    %c0_5 = arith.constant 0 : index
    %c0_6 = arith.constant 0 : index
    %3 = vector.load %arg4[%c0_5, %c0_6] : memref<8x1xi32, #tpu.memory_space<vmem>>, vector<8x1xi32>
    %4 = tpu.iota {dimensions = array<i32: 1>} : vector<8x32xi32>
    %5 = vector.broadcast %3 : vector<8x1xi32> to vector<8x32xi32>
    %6 = arith.cmpi eq, %4, %5 : vector<8x32xi32>
    %cst = arith.constant dense<0xFF800000> : vector<8xf32>
    %7 = vector.multi_reduction <maximumf>, %0, %cst [1] : vector<8x32xf32> to vector<8xf32>
    %8 = vector.shape_cast %7 : vector<8xf32> to vector<8x1xf32>
    %9 = vector.broadcast %8 : vector<8x1xf32> to vector<8x32xf32>
    %10 = arith.subf %0, %9 : vector<8x32xf32>
    %11 = math.exp %10 : vector<8x32xf32>
    %cst_7 = arith.constant dense<0.000000e+00> : vector<8xf32>
    %12 = vector.multi_reduction <add>, %11, %cst_7 [1] : vector<8x32xf32> to vector<8xf32>
    %13 = vector.shape_cast %12 : vector<8xf32> to vector<8x1xf32>
    %14 = math.log %13 : vector<8x1xf32>
    %15 = vector.broadcast %14 : vector<8x1xf32> to vector<8x32xf32>
    %16 = arith.subf %10, %15 : vector<8x32xf32>
    %cst_8 = arith.constant dense<0xFF800000> : vector<8xf32>
    %17 = vector.multi_reduction <maximumf>, %1, %cst_8 [1] : vector<8x32xf32> to vector<8xf32>
    %18 = vector.shape_cast %17 : vector<8xf32> to vector<8x1xf32>
    %19 = vector.broadcast %18 : vector<8x1xf32> to vector<8x32xf32>
    %20 = arith.subf %1, %19 : vector<8x32xf32>
    %21 = math.exp %20 : vector<8x32xf32>
    %cst_9 = arith.constant dense<0.000000e+00> : vector<8xf32>
    %22 = vector.multi_reduction <add>, %21, %cst_9 [1] : vector<8x32xf32> to vector<8xf32>
    %23 = vector.shape_cast %22 : vector<8xf32> to vector<8x1xf32>
    %24 = tpu.reciprocal %23 : vector<8x1xf32> -> vector<8x1xf32>
    %25 = vector.broadcast %24 : vector<8x1xf32> to vector<8x32xf32>
    %26 = arith.mulf %21, %25 : vector<8x32xf32>
    %cst_10 = arith.constant 1.000000e-07 : f32
    %27 = vector.broadcast %cst_10 : f32 to vector<8x32xf32>
    %28 = arith.addf %26, %27 : vector<8x32xf32>
    %29 = math.log %28 : vector<8x32xf32>
    %30 = arith.subf %29, %16 : vector<8x32xf32>
    %31 = arith.mulf %28, %30 : vector<8x32xf32>
    %cst_11 = arith.constant dense<0.000000e+00> : vector<8xf32>
    %32 = vector.multi_reduction <add>, %31, %cst_11 [1] : vector<8x32xf32> to vector<8xf32>
    %33 = vector.shape_cast %32 : vector<8xf32> to vector<8x1xf32>
    %34 = arith.addf %8, %14 : vector<8x1xf32>
    %cst_12 = arith.constant dense<0xFF800000> : vector<8xf32>
    %35 = vector.multi_reduction <maximumf>, %2, %cst_12 [1] : vector<8x32xf32> to vector<8xf32>
    %36 = vector.shape_cast %35 : vector<8xf32> to vector<8x1xf32>
    %37 = vector.broadcast %36 : vector<8x1xf32> to vector<8x32xf32>
    %38 = arith.subf %2, %37 : vector<8x32xf32>
    %39 = math.exp %38 : vector<8x32xf32>
    %cst_13 = arith.constant dense<0.000000e+00> : vector<8xf32>
    %40 = vector.multi_reduction <add>, %39, %cst_13 [1] : vector<8x32xf32> to vector<8xf32>
    %41 = vector.shape_cast %40 : vector<8xf32> to vector<8x1xf32>
    %42 = math.log %41 : vector<8x1xf32>
    %43 = arith.addf %36, %42 : vector<8x1xf32>
    %cst_14 = arith.constant 1.000000e+00 : f32
    %44 = vector.broadcast %cst_14 : f32 to vector<8x32xf32>
    %45 = arith.mulf %44, %2 : vector<8x32xf32>
    %46 = arith.addf %0, %45 : vector<8x32xf32>
    %cst_15 = arith.constant 0.000000e+00 : f32
    %47 = vector.broadcast %cst_15 : f32 to vector<8x32xf32>
    %48 = arith.select %6, %46, %47 : vector<8x32xi1>, vector<8x32xf32>
    %cst_16 = arith.constant dense<0.000000e+00> : vector<8xf32>
    %49 = vector.multi_reduction <add>, %48, %cst_16 [1] : vector<8x32xf32> to vector<8xf32>
    %50 = vector.shape_cast %49 : vector<8xf32> to vector<8x1xf32>
    %cst_17 = arith.constant 1.000000e+00 : f32
    %51 = vector.broadcast %cst_17 : f32 to vector<8x1xf32>
    %52 = arith.mulf %51, %43 : vector<8x1xf32>
    %53 = arith.addf %34, %52 : vector<8x1xf32>
    %54 = arith.subf %53, %50 : vector<8x1xf32>
    %cst_18 = arith.constant 1.000000e+00 : f32
    %55 = vector.broadcast %cst_18 : f32 to vector<8x1xf32>
    %56 = arith.mulf %55, %33 : vector<8x1xf32>
    %57 = arith.addf %54, %56 : vector<8x1xf32>
    %c0_19 = arith.constant 0 : index
    %c0_20 = arith.constant 0 : index
    %58 = vector.load %arg5[%c0_19, %c0_20] : memref<8x1xf32, #tpu.memory_space<vmem>>, vector<8x1xf32>
    tpu.vector_store %arg5[%c0_19, %c0_20], %57 {strides = array<i32>} : memref<8x1xf32, #tpu.memory_space<vmem>>, vector<8x1xf32>,
    return
  }
  func.func @transform_0(%arg0: i32) -> (i32, i32) {
    %c0_i32 = arith.constant 0 : i32
    %c0_i32_0 = arith.constant 0 : i32
    return %arg0, %c0_i32 : i32, i32
  }
  func.func @transform_1(%arg0: i32) -> (i32, i32) {
    %c0_i32 = arith.constant 0 : i32
    %c0_i32_0 = arith.constant 0 : i32
    return %arg0, %c0_i32 : i32, i32
  }
  func.func @transform_2(%arg0: i32) -> (i32, i32) {
    %c0_i32 = arith.constant 0 : i32
    %c0_i32_0 = arith.constant 0 : i32
    return %arg0, %c0_i32 : i32, i32
  }
  func.func @transform_3(%arg0: i32) -> (i32, i32) {
    %c0_i32 = arith.constant 0 : i32
    %c0_i32_0 = arith.constant 0 : i32
    return %arg0, %c0_i32 : i32, i32
  }
  func.func @transform_4(%arg0: i32) -> (i32, i32) {
    %c0_i32 = arith.constant 0 : i32
    %c0_i32_0 = arith.constant 0 : i32
    return %arg0, %c0_i32 : i32, i32
  }
}

</mosaic_0001>

<bundles_post_ra>
// kernel: tpu_custom_call.1
= control target key start
LH: loop header
LB: loop body
LE: loop exit
PB: predicated region body
PF: predicated region fallthrough
CT: control target
= control target key end

     0   :  { %9 = vsyncpa [#allocation3], 0  ;;  %s255_s0 = inlined_call_operand.vmem [shape: f32[8,32], index: 0, kind: input, shape index: {}]   ;;  %s256_s1 = inlined_call_operand.hbm [shape: f32[8,32], index: 1, kind: input, shape index: {}]   ;;  %s257_s2 = inlined_call_operand.hbm [shape: f32[8,32], index: 2, kind: input, shape index: {}]   ;;  %s258_s3 = inlined_call_operand.vmem [shape: s32[8,1], index: 3, kind: input, shape index: {}]   ;;  %s259_s4 = inlined_call_operand.vmem [shape: f32[8,1], index: 4, kind: output, shape index: {}]  }
   0x1   :  { %s18_s17 = sshll.u32 %s256_s1, 4  ;;  %s19_s17 = int_to_ptr.hbm [resolvable:$true] %s18_s17 }
   0x2   :  { %10 = vsyncpa [#allocation5], 0  ;;  %s200_s18 = smov [#allocation2]   ;;  %s29_s22 = sshll.u32 %s257_s2, 4  ;;  %s30_s22 = int_to_ptr.hbm [resolvable:$true] %s29_s22 }
   0x3   :  { %s20_s19 = sshll.u32 %s200_s18, 4  ;;  %s201_s23 = smov [#allocation4]   ;;  %s21_s19 = int_to_ptr.vmem [resolvable:$true] %s20_s19 }
   0x4   :  { %23 = dma.hbm_to_vmem [thread:$0]  %s19_s17, 128, %s21_s19, [#allocation3]  }
   0x5   :  { %s31_s24 = sshll.u32 %s201_s23, 4  ;;  %s32_s24 = int_to_ptr.vmem [resolvable:$true] %s31_s24 }
   0x6   :  { %34 = dma.hbm_to_vmem [thread:$0]  %s30_s22, 128, %s32_s24, [#allocation5]  }
   0x7   :  { %196 = dma.done.wait [#allocation3], 128  }
   0x8   :  { %197 = vsyncadd [#allocation3], 4294967168 }
   0x9   :  { %198 = dma.done.wait [#allocation5], 128  }
   0xa   :  { %199 = vsyncadd [#allocation5], 4294967168  ;;  %vm55_vm0 = vcmask 261120   ;;  %v46_v0 = vld [vmem:[#allocation2] sm:$0xff]  ;;  %v202_v4 = vmov 0   ;;  %v47_v13 = vld [vmem:[#allocation4] sm:$0xff]  ;;  %v49_v24 = vlaneseq }
   0xb   :  { %v68_v1 = vsel %vm55_vm0, %v46_v0, -inf  ;;  %v45_v2 = vld [vmem:[%s255_s0] sm:$0xff]  ;;  %132 = vset.pattern.permute.xlu2 %v202_v4  ;;  %133 = vset.pattern.permute.xlu0 %v202_v4  ;;  %v101_v14 = vsel %vm55_vm0, %v47_v13, -inf  ;;  %vm121_vm6 = vcmask 7168  }
   0xc   :  { %69 = vmax.xlane.f32.xlu0 %v68_v1  ;;  %v56_v3 = vsel %vm55_vm0, %v45_v2, -inf  ;;  %v48_v17 = vld [vmem:[%s258_s3] sm:$0xff]  ;;  %v50_v30 = vand.u32 127, %v49_v24  ;;  %v113_v31 = vadd.f32 %v47_v13, %v45_v2 }
  0x14   :  { %57 = vmax.xlane.f32.xlu0 %v56_v3 }
  0x7f   :  { %v70_v5 = vpop.xlane.xlu0 %69 }
  0x80   :  { %v71_v6 = vsub.f32 %v46_v0, %v70_v5 }
  0x82   :  { %v72_v7 = vmul.f32 1.442695, %v71_v6 }
  0x84   :  { %134 = vpow2.f32 %v72_v7 }
  0x87   :  { %v239_v8 = vpop.xlane.xlu0 %57 }
  0x88   :  { %v59_v9 = vsub.f32 %v45_v2, %v239_v8 }
  0x8a   :  { %v135_v10 = vpop.eup %134  ;;  %v60_v11 = vmul.f32 1.442695, %v59_v9 }
  0x8b   :  { %v74_v12 = vsel %vm55_vm0, %v135_v10, 0.0 }
  0x8c   :  { %136 = vpow2.f32 %v60_v11  ;;  %75 = vadd.xlane.f32.xlu1 %v74_v12 }
  0x92   :  { %v137_v15 = vpop.eup %136 }
  0x93   :  { %v62_v16 = vsel %vm55_vm0, %v137_v15, 0.0 }
  0x94   :  { %102 = vmax.xlane.f32.xlu1 %v101_v14  ;;  %63 = vadd.xlane.f32.xlu2 %v62_v16 }
  0xac   :  { %52 = vperm.xlu2 %132, %v48_v17  }
  0xff   :  { %v76_v18 = vpop.xlane.xlu1 %75 }
 0x100   :  { %138 = vrcp.f32 %v76_v18  ;;  %v88_v26 = vand.u32 2147483648, %v76_v18  ;;  %v86_v29 = vand.u32 2147483647, %v76_v18  ;;  %vm82_vm2 = vweird.f32 %v76_v18 }
 0x102   :  { %v89_v33 = vor.u32 1.1754944e-38, %v88_v26  ;;  %vm87_vm4 = vcmp.eq.f32.partialorder %v86_v29, 8.507059e+37 }
 0x106   :  { %v139_v19 = vpop.eup %138 }
 0x107   :  { %v78_v20 = vmul.f32 %v139_v19, %v76_v18  ;;  %v103_v21 = vpop.xlane.xlu1 %102  ;;  %v64_v22 = vpop.xlane.xlu2 %63  ;;  %vm83_vm1 = vweird.f32 %v139_v19 }
 0x108   :  { %v104_v23 = vsub.f32 %v47_v13, %v103_v21  ;;  %vm84_vm3 = vmor %vm82_vm2, %vm83_vm1 }
 0x109   :  { %v79_v25 = vsub.f32 1.0, %v78_v20 }
 0x10a   :  { %v105_v27 = vmul.f32 1.442695, %v104_v23 }
 0x10b   :  { %v80_v28 = vmul.f32 %v139_v19, %v79_v25 }
 0x10c   :  { %140 = vpow2.f32 %v105_v27 }
 0x10d   :  { %v81_v32 = vadd.f32 %v139_v19, %v80_v28  ;;  %142 = vlog2.f32 %v64_v22 }
 0x10f   :  { %v53_v34 = vpop.permute.xlu2 %52  ;;  %v85_v35 = vsel %vm84_vm3, %v139_v19, %v81_v32 }
 0x110   :  { %vm54_vm5 = vcmp.eq.s32.totalorder %v50_v30, %v53_v34  ;;  %v90_v36 = vsel %vm87_vm4, %v89_v33, %v85_v35 }
 0x111   :  { %v114_v37 = vsel %vm54_vm5, %v113_v31, 0.0  ;;  %v91_v38 = vmul.f32 %v135_v10, %v90_v36 }
 0x112   :  { %v141_v39 = vpop.eup %140  ;;  %v115_v40 = vsel %vm55_vm0, %v114_v37, 0.0 }
 0x113   :  { %v107_v41 = vsel %vm55_vm0, %v141_v39, 0.0  ;;  %116 = vadd.xlane.f32.xlu1 %v115_v40  ;;  %v92_v42 = vadd.f32 1e-07, %v91_v38  ;;  %v143_v43 = vpop.eup %142 }
 0x114   :  { %108 = vadd.xlane.f32.xlu0 %v107_v41  ;;  %v66_v44 = vmul.f32 0.6931472, %v143_v43 }
 0x115   :  { %144 = vlog2.f32 %v92_v42 }
 0x116   :  { %v67_v46 = vsub.f32 %v59_v9, %v66_v44  ;;  %v100_v54 = vadd.f32 %v66_v44, %v239_v8 }
 0x11b   :  { %v145_v45 = vpop.eup %144 }
 0x11c   :  { %v94_v47 = vmul.f32 0.6931472, %v145_v45 }
 0x11e   :  { %v95_v48 = vsub.f32 %v94_v47, %v67_v46 }
 0x120   :  { %v96_v49 = vmul.f32 %v95_v48, %v92_v42 }
 0x122   :  { %v97_v50 = vsel %vm55_vm0, %v96_v49, 0.0 }
 0x123   :  { %98 = vadd.xlane.f32.xlu0 %v97_v50 }
 0x186   :  { %v117_v56 = vpop.xlane.xlu1 %116 }
 0x187   :  { %v109_v51 = vpop.xlane.xlu0 %108 }
 0x188   :  { %146 = vlog2.f32 %v109_v51 }
 0x18e   :  { %v147_v52 = vpop.eup %146 }
 0x18f   :  { %v111_v53 = vmul.f32 0.6931472, %v147_v52 }
 0x191   :  { %v112_v55 = vadd.f32 %v111_v53, %v103_v21 }
 0x193   :  { %v118_v57 = vadd.f32 %v112_v55, %v100_v54 }
 0x195   :  { %v119_v58 = vsub.f32 %v118_v57, %v117_v56 }
 0x196   :  { %v99_v59 = vpop.xlane.xlu0 %98 }
 0x197   :  { %v120_v60 = vadd.f32 %v119_v58, %v99_v59 }
 0x199   :  { %122 = vst.msk [vmem:[%s259_s4] sm:$0xff] %vm121_vm6, %v120_v60 }
 0x19a   :  { %127 = vsyncpa [#allocation3], 1 }
 0x19b   :  { %128 = vsyncpa [#allocation5], 1 }

</bundles_post_ra>
